<compile_context>
chip_gen: v5e
topology: v5e:2x2
jax: 0.10.0
libtpu: 0.0.40
codegen_flags: <defaults>
</compile_context>

<pallas_src>
import functools

import jax
import jax.numpy as jnp
from jax.experimental import pallas as pl
from jax.experimental.pallas import tpu as pltpu


def _mimic_lr_kernel(x_ref, w_ref, b_ref, o_ref, *, d, g, transpose_out):
    # x_ref: (TB, g*d) input tile (VMEM)
    # w_ref: (1, g*d)  lane-dense weight row, pre-tiled g times (VMEM)
    # b_ref: (1, 1)    scalar bias (SMEM)
    # o_ref: (g, TB) f32 if transpose_out else (TB, 1) f32 (VMEM)
    #
    # f32 compute keeps the kernel portable (v5e VPU has no bf16). Passing
    # bf16 inputs still halves the HBM stream, which is what dominates here.
    x = x_ref[...].astype(jnp.float32)
    w = w_ref[...].astype(jnp.float32)
    prod = x * w                                           # (TB, g*d)  VPU

    # Per-segment lane reduction (XLU), statically unrolled over the g folded
    # rows packed into each 128-lane register row.
    cols = [
        jnp.sum(prod[:, j * d:(j + 1) * d], axis=-1, keepdims=True)
        for j in range(g)
    ]
    z = cols[0] if g == 1 else jnp.concatenate(cols, axis=-1)   # (TB, g)
    z = z + b_ref[0, 0]
    y = 1.0 / (1.0 + jnp.exp(-z))                          # exp on the EUP

    if transpose_out:
        # Lane-dense output: (TB, g) -> (g, TB) so the store/writeback runs
        # along the 128-lane axis (unmasked vst, large contiguous DMA chunks).
        o_ref[...] = jnp.transpose(y).astype(o_ref.dtype)
    else:
        o_ref[...] = y.astype(o_ref.dtype)


def _vmem_capacity_bytes():
    try:
        return int(pltpu.get_tpu_info().vmem_capacity_bytes)
    except Exception:
        # Conservative fallback = v7x per-TensorCore VMEM; safe on all gens.
        return 64 * 1024 * 1024


def _pick_batch_tile(rows, row_bytes, vmem_bytes, row_align):
    """Rows per grid step, sized by bytes-per-buffer (no fixed row cap)."""
    # Each x buffer targets vmem/5, clamped to [2 MiB, 32 MiB]:
    #   v7x (64 MiB VMEM)      -> ~12.8 MiB/buffer
    #   v5e/v6e (128 MiB VMEM) -> ~25.6 MiB/buffer
    # Double buffering then stays well inside the scoped VMEM limit.
    per_buffer = min(max(vmem_bytes // 5, 2 << 20), 32 << 20)
    tb = per_buffer // row_bytes
    if tb >= rows:
        # Whole batch fits in one buffer. Still emit >=2 tiles when alignment
        # allows so both v7x TensorCores get a batch tile ("parallel" axis).
        half = (rows // 2 // row_align) * row_align
        return half if half >= row_align else rows
    tb = (tb // row_align) * row_align
    return max(tb, row_align)


def mimic_lr_forward(x, weight, bias, *, block_b=None):
    """Pallas forward pass for MimicLR: sigmoid(x @ weight.T + bias).

    Args:
      x:      (B, D) features (f32 or bf16; bf16 halves HBM traffic).
      weight: (1, D) nn.Linear(input_dim, 1).weight layout.
      bias:   (1,)   nn.Linear bias.
      block_b: optional batch-tile (rows per grid step) override.

    Returns:
      (B, 1) float32.
    """
    B, D = x.shape
    w_row = weight.reshape(1, D)
    b = bias.reshape(1, 1).astype(jnp.float32)
    itemsize = jnp.dtype(x.dtype).itemsize

    # Fold batch rows into the 128-lane dimension when D is small: x (B, D) ->
    # (B/g, g*D) is a free row-major reshape; the weight row is tiled g times.
    # Only fold when it needs no padding copy (B divisible by g).
    g = max(1, 128 // D)
    fold = g > 1 and (B % g == 0)
    if fold:
        rows, dg = B // g, g * D
        x_in = x.reshape(rows, dg)
        w_in = jnp.tile(w_row, (1, g))
    else:
        g = 1
        rows, dg = B, D
        x_in = x
        w_in = w_row

    transpose_out = fold               # lane-dense (g, rows) output slab
    row_align = 128 if transpose_out else 8
    row_bytes = dg * itemsize

    vmem_bytes = _vmem_capacity_bytes()
    if block_b is not None:
        tb = min(int(block_b), rows)
        if tb < rows:
            tb = max(row_align, (tb // row_align) * row_align)
    else:
        tb = _pick_batch_tile(rows, row_bytes, vmem_bytes, row_align)
    if tb >= rows:
        tb = rows
    num_tiles = pl.cdiv(rows, tb)

    vmem_limit = min(int(vmem_bytes) * 3 // 4, 112 << 20)
    if 2 * tb * row_bytes + (1 << 20) > vmem_limit:
        # TODO(synk): add a D (reduction) grid axis with an f32 accumulator
        # (pl.when init/finalize, axis "arbitrary") for very large input_dim.
        raise ValueError(
            f"input_dim={D} too large for a full-D block in VMEM "
            f"(needs {2 * tb * row_bytes} bytes, limit {vmem_limit})")

    if transpose_out:
        out_shape = jax.ShapeDtypeStruct((g, rows), jnp.float32)
        out_spec = pl.BlockSpec((g, tb), lambda i: (0, i))
    else:
        out_shape = jax.ShapeDtypeStruct((rows, 1), jnp.float32)
        out_spec = pl.BlockSpec((tb, 1), lambda i: (i, 0))

    kernel = functools.partial(
        _mimic_lr_kernel, d=D, g=g, transpose_out=transpose_out)

    cost = pl.CostEstimate(
        flops=2 * B * D,
        transcendentals=B,
        bytes_accessed=B * D * itemsize + dg * jnp.dtype(w_in.dtype).itemsize + B * 4,
    )

    out = pl.pallas_call(
        kernel,
        out_shape=out_shape,
        grid=(num_tiles,),
        in_specs=[
            pl.BlockSpec((tb, dg), lambda i: (i, 0)),                          # x stream (double-buffered)
            pl.BlockSpec((1, dg), lambda i: (0, 0)),                           # weight row (resident)
            pl.BlockSpec((1, 1), lambda i: (0, 0), memory_space=pltpu.SMEM),   # bias scalar
        ],
        out_specs=out_spec,
        compiler_params=pltpu.CompilerParams(
            dimension_semantics=("parallel",),   # v7x: batch tiles across 2 TCs
            vmem_limit_bytes=vmem_limit,
        ),
        cost_estimate=cost,
    )(x_in, w_in, b)

    if transpose_out:
        # (g, B/g) -> (B/g, g) -> (B, 1); row-major order matches the fold.
        return jnp.transpose(out).reshape(B, 1)
    return out


if __name__ == "__main__":
    key = jax.random.PRNGKey(0)
    kx, kw, kb, kx2, kx3 = jax.random.split(key, 5)

    D = 32
    bound = float(D) ** -0.5
    weight = jax.random.uniform(kw, (1, D), jnp.float32, -bound, bound)
    bias = jax.random.uniform(kb, (1,), jnp.float32, -bound, bound)

    def reference(xv):
        return jax.nn.sigmoid(
            jnp.matmul(xv, weight.T, precision=jax.lax.Precision.HIGHEST) + bias)

    # 1) Module-consistent small shape (batch=8, input_dim=32): folded path.
    x = jax.random.normal(kx, (8, D), jnp.float32)
    out = jax.block_until_ready(mimic_lr_forward(x, weight, bias))
    assert out.shape == (8, 1)
    assert jnp.allclose(out, reference(x), atol=1e-5, rtol=1e-5), "mismatch (small)"

    # 2) Larger batch: folded path, multi-tile grid with a ragged last tile.
    x2 = jax.random.normal(kx2, (65_560, D), jnp.float32)
    out2 = jax.block_until_ready(mimic_lr_forward(x2, weight, bias))
    assert out2.shape == (65_560, 1)
    assert jnp.allclose(out2, reference(x2), atol=1e-5, rtol=1e-5), "mismatch (tiled)"

    # 3) Batch not divisible by the fold factor: unfolded (B, 1) path.
    x3 = jax.random.normal(kx3, (10, D), jnp.float32)
    out3 = jax.block_until_ready(mimic_lr_forward(x3, weight, bias))
    assert out3.shape == (10, 1)
    assert jnp.allclose(out3, reference(x3), atol=1e-5, rtol=1e-5), "mismatch (unfolded)"

    print("KERNEL_OK")
</pallas_src>

<mosaic_0001>
module attributes {stable_mosaic.version = 11 : i64} {
  func.func @_mimic_lr_kernel(%arg0: i32, %arg1: memref<2x128xf32, #tpu.memory_space<vmem>>, %arg2: memref<1x128xf32, #tpu.memory_space<vmem>>, %arg3: memref<1x1xf32, #tpu.memory_space<smem>>, %arg4: memref<4x2xf32, #tpu.memory_space<vmem>>) attributes {dimension_semantics = [#tpu.dimension_semantics<parallel>], iteration_bounds = array<i64: 1>, scalar_prefetch = 0 : i64, scratch_operands = 0 : i64, tpu.core_type = #tpu.core_type<tc>, window_params = [{transform_indices = @transform_0, window_bounds = array<i64: 2, 128>}, {pipeline_mode = #tpu.pipeline_mode<synchronous>, transform_indices = @transform_1, window_bounds = array<i64: 1, 128>}, {transform_indices = @transform_2, window_bounds = array<i64: 1, 1>}, {transform_indices = @transform_3, window_bounds = array<i64: 4, 2>}]} {
    %c0 = arith.constant 0 : index
    %c0_0 = arith.constant 0 : index
    %0 = vector.load %arg1[%c0, %c0_0] : memref<2x128xf32, #tpu.memory_space<vmem>>, vector<2x128xf32>
    %c0_1 = arith.constant 0 : index
    %c0_2 = arith.constant 0 : index
    %1 = vector.load %arg2[%c0_1, %c0_2] : memref<1x128xf32, #tpu.memory_space<vmem>>, vector<1x128xf32>
    %2 = vector.broadcast %1 : vector<1x128xf32> to vector<2x128xf32>
    %3 = arith.mulf %0, %2 : vector<2x128xf32>
    %4 = vector.extract_strided_slice %3 {offsets = [0, 0], sizes = [2, 32], strides = [1, 1]} : vector<2x128xf32> to vector<2x32xf32>
    %cst = arith.constant dense<0.000000e+00> : vector<2xf32>
    %5 = vector.multi_reduction <add>, %4, %cst [1] : vector<2x32xf32> to vector<2xf32>
    %6 = vector.shape_cast %5 : vector<2xf32> to vector<2x1xf32>
    %7 = vector.extract_strided_slice %3 {offsets = [0, 32], sizes = [2, 32], strides = [1, 1]} : vector<2x128xf32> to vector<2x32xf32>
    %cst_3 = arith.constant dense<0.000000e+00> : vector<2xf32>
    %8 = vector.multi_reduction <add>, %7, %cst_3 [1] : vector<2x32xf32> to vector<2xf32>
    %9 = vector.shape_cast %8 : vector<2xf32> to vector<2x1xf32>
    %10 = vector.extract_strided_slice %3 {offsets = [0, 64], sizes = [2, 32], strides = [1, 1]} : vector<2x128xf32> to vector<2x32xf32>
    %cst_4 = arith.constant dense<0.000000e+00> : vector<2xf32>
    %11 = vector.multi_reduction <add>, %10, %cst_4 [1] : vector<2x32xf32> to vector<2xf32>
    %12 = vector.shape_cast %11 : vector<2xf32> to vector<2x1xf32>
    %13 = vector.extract_strided_slice %3 {offsets = [0, 96], sizes = [2, 32], strides = [1, 1]} : vector<2x128xf32> to vector<2x32xf32>
    %cst_5 = arith.constant dense<0.000000e+00> : vector<2xf32>
    %14 = vector.multi_reduction <add>, %13, %cst_5 [1] : vector<2x32xf32> to vector<2xf32>
    %15 = vector.shape_cast %14 : vector<2xf32> to vector<2x1xf32>
    %16 = tpu.concatenate %6, %9, %12, %15 in 1 : vector<2x1xf32>, vector<2x1xf32>, vector<2x1xf32>, vector<2x1xf32> -> vector<2x4xf32>
    %c0_6 = arith.constant 0 : index
    %c0_7 = arith.constant 0 : index
    %17 = memref.load %arg3[%c0_6, %c0_7] : memref<1x1xf32, #tpu.memory_space<smem>>
    %18 = vector.broadcast %17 : f32 to vector<2x4xf32>
    %19 = arith.addf %16, %18 : vector<2x4xf32>
    %cst_8 = arith.constant 0.000000e+00 : f32
    %20 = vector.broadcast %cst_8 : f32 to vector<2x4xf32>
    %21 = arith.subf %20, %19 : vector<2x4xf32>
    %22 = math.exp %21 : vector<2x4xf32>
    %cst_9 = arith.constant 1.000000e+00 : f32
    %23 = vector.broadcast %cst_9 : f32 to vector<2x4xf32>
    %24 = arith.addf %23, %22 : vector<2x4xf32>
    %cst_10 = arith.constant 1.000000e+00 : f32
    %25 = vector.broadcast %cst_10 : f32 to vector<2x4xf32>
    %26 = arith.divf %25, %24 : vector<2x4xf32>
    %27 = tpu.transpose %26, [1, 0] : vector<2x4xf32> -> vector<4x2xf32>
    %c0_11 = arith.constant 0 : index
    %c0_12 = arith.constant 0 : index
    %28 = vector.load %arg4[%c0_11, %c0_12] : memref<4x2xf32, #tpu.memory_space<vmem>>, vector<4x2xf32>
    tpu.vector_store %arg4[%c0_11, %c0_12], %27 {strides = array<i32>} : memref<4x2xf32, #tpu.memory_space<vmem>>, vector<4x2xf32>,
    return
  }
  func.func @transform_0(%arg0: i32) -> (i32, i32) {
    %c0_i32 = arith.constant 0 : i32
    %c0_i32_0 = arith.constant 0 : i32
    return %arg0, %c0_i32 : i32, i32
  }
  func.func @transform_1(%arg0: i32) -> (i32, i32) {
    %c0_i32 = arith.constant 0 : i32
    %c0_i32_0 = arith.constant 0 : i32
    %c0_i32_1 = arith.constant 0 : i32
    return %c0_i32, %c0_i32_0 : i32, i32
  }
  func.func @transform_2(%arg0: i32) -> (i32, i32) {
    %c0_i32 = arith.constant 0 : i32
    %c0_i32_0 = arith.constant 0 : i32
    %c0_i32_1 = arith.constant 0 : i32
    return %c0_i32, %c0_i32_0 : i32, i32
  }
  func.func @transform_3(%arg0: i32) -> (i32, i32) {
    %c0_i32 = arith.constant 0 : i32
    %c0_i32_0 = arith.constant 0 : i32
    return %c0_i32, %arg0 : i32, i32
  }
}

</mosaic_0001>

<bundles_post_ra>
// kernel: tpu_custom_call.1
= control target key start
LH: loop header
LB: loop body
LE: loop exit
PB: predicated region body
PF: predicated region fallthrough
CT: control target
= control target key end

     0   :  { %9 = vsyncpa [#allocation4], 0  ;;  %s161_s15 = smov [#allocation3]   ;;  %s197_s0 = inlined_call_operand.vmem [shape: f32[2,128], index: 0, kind: input, shape index: {}]   ;;  %s198_s1 = inlined_call_operand.hbm [shape: f32[1,128], index: 1, kind: input, shape index: {}]   ;;  %s199_s2 = inlined_call_operand.<no memory space> [shape: f32[1,1], index: 2, kind: input, shape index: {}]   ;;  %s200_s3 = inlined_call_operand.vmem [shape: f32[4,2], index: 3, kind: output, shape index: {}]  }
   0x1   :  { %s17_s14 = sshll.u32 %s198_s1, 4  ;;  %s19_s16 = sshll.u32 %s161_s15, 4  ;;  %s18_s14 = int_to_ptr.hbm [resolvable:$true] %s17_s14  ;;  %s20_s16 = int_to_ptr.vmem [resolvable:$true] %s19_s16 }
   0x2   :  { %22 = dma.hbm_to_vmem [thread:$0]  %s18_s14, 16, %s20_s16, [#allocation4]  }
   0x3   :  { %159 = dma.done.wait [#allocation4], 16  }
   0x4   :  { %160 = vsyncadd [#allocation4], 4294967280  ;;  %v29_v0 = vld [vmem:[%s197_s0] sm:$0x3]  ;;  %s162_s19 = smov 96   ;;  %s163_s20 = smov 32   ;;  %v65_v15 = vstv %s199_s2 }
   0x5   :  { %v130_v1 = vld [vmem:[#allocation3] ss:$0 sm:$0xff]  ;;  %s164_s21 = smov 64   ;;  %vm35_vm0 = vcmask 254976   ;;  %vm58_vm1 = vcmask 7168   ;;  %vm60_vm2 = vcmask 15360  }
   0x6   :  { %v34_v2 = vmul.f32 %v130_v1, %v29_v0  ;;  %vm62_vm3 = vcmask 23552   ;;  %vm118_vm8 = vcmask 11264  }
   0x8   :  { %40 = vrot.lane.b32.xlu0 %v34_v2, %s162_s19  ;;  %52 = vrot.lane.b32.xlu1 %v34_v2, %s163_s20  ;;  %v36_v3 = vsel %vm35_vm0, %v34_v2, 0.0 }
  0x10   :  { %46 = vrot.lane.b32.xlu0 %v34_v2, %s164_s21 }
  0x32   :  { %37 = vadd.xlane.f32.xlu1 %v36_v3 }
  0x7a   :  { %v41_v4 = vpop.permute.xlu0 %40  ;;  %v53_v5 = vpop.permute.xlu1 %52 }
  0x7b   :  { %v43_v6 = vsel %vm35_vm0, %v41_v4, 0.0  ;;  %v55_v7 = vsel %vm35_vm0, %v53_v5, 0.0 }
  0x7c   :  { %44 = vadd.xlane.f32.xlu2 %v43_v6  ;;  %56 = vadd.xlane.f32.xlu0 %v55_v7 }
  0x82   :  { %v47_v8 = vpop.permute.xlu0 %46 }
  0x83   :  { %v49_v9 = vsel %vm35_vm0, %v47_v8, 0.0 }
  0x84   :  { %50 = vadd.xlane.f32.xlu2 %v49_v9 }
  0xa5   :  { %v38_v11 = vpop.xlane.xlu1 %37 }
  0xef   :  { %v45_v10 = vpop.xlane.xlu2 %44  ;;  %v57_v12 = vpop.xlane.xlu0 %56 }
  0xf0   :  { %v59_v13 = vsel %vm58_vm1, %v38_v11, %v45_v10 }
  0xf7   :  { %v51_v14 = vpop.xlane.xlu2 %50 }
  0xf8   :  { %v61_v16 = vsel %vm60_vm2, %v59_v13, %v51_v14 }
  0xf9   :  { %v63_v17 = vsel %vm62_vm3, %v61_v16, %v57_v12 }
  0xfa   :  { %v66_v18 = vadd.f32 %v65_v15, %v63_v17 }
  0xfc   :  { %v67_v19 = vsub.f32 0.0, %v66_v18 }
  0xfe   :  { %v68_v20 = vmul.f32 1.442695, %v67_v19 }
 0x100   :  { %131 = vpow2.f32 %v68_v20 }
 0x106   :  { %v132_v21 = vpop.eup %131 }
 0x107   :  { %v70_v22 = vadd.f32 1.0, %v132_v21 }
 0x109   :  { %133 = vrcp.f32 %v70_v22  ;;  %v82_v26 = vand.u32 2147483648, %v70_v22  ;;  %v80_v28 = vand.u32 2147483647, %v70_v22  ;;  %vm76_vm5 = vweird.f32 %v70_v22 }
 0x10b   :  { %v83_v30 = vor.u32 1.1754944e-38, %v82_v26  ;;  %vm81_vm7 = vcmp.eq.f32.partialorder %v80_v28, 8.507059e+37 }
 0x10f   :  { %v134_v23 = vpop.eup %133 }
 0x110   :  { %v72_v24 = vmul.f32 %v134_v23, %v70_v22  ;;  %vm77_vm4 = vweird.f32 %v134_v23 }
 0x111   :  { %vm78_vm6 = vmor %vm76_vm5, %vm77_vm4 }
 0x112   :  { %v73_v25 = vsub.f32 1.0, %v72_v24 }
 0x114   :  { %v74_v27 = vmul.f32 %v134_v23, %v73_v25 }
 0x116   :  { %v75_v29 = vadd.f32 %v134_v23, %v74_v27 }
 0x118   :  { %v79_v31 = vsel %vm78_vm6, %v134_v23, %v75_v29 }
 0x119   :  { %v84_v32 = vsel %vm81_vm7, %v83_v30, %v79_v31 }
 0x11a   :  { %86 = vxpose.xlu2.b32.start.end [1/1] (short) (narrow) %v84_v32, 8 }
 0x1b3   :  { %v102_v33 = vpop.trf.xlu2 }
 0x1b4   :  { %119 = vst.msk [vmem:[%s200_s3] sm:$0xf] %vm118_vm8, %v102_v33 }
 0x1b5   :  { %124 = vsyncpa [#allocation4], 1 }

</bundles_post_ra>
